<compile_context>
chip_gen: v6e
topology: v6e:2x2x1
jax: 0.10.0
libtpu: 0.0.40
codegen_flags: <defaults>
</compile_context>

<pallas_src>
import jax
import jax.numpy as jnp
from jax.experimental import pallas as pl
from jax.experimental.pallas import tpu as pltpu


# ----------------------------- kernels ------------------------------------- #

def _mlp(pooled_f32, w1_ref, b1_ref, w2_ref, b2_ref):
    """ReLU(pooled @ w1 + b1) @ w2 + b2, accumulating in float32."""
    h = jnp.dot(pooled_f32.astype(w1_ref.dtype), w1_ref[...],
                preferred_element_type=jnp.float32)
    h = h + b1_ref[...].astype(jnp.float32)
    h = jnp.maximum(h, 0.0)
    out = jnp.dot(h.astype(w2_ref.dtype), w2_ref[...],
                  preferred_element_type=jnp.float32)
    out = out + b2_ref[...].astype(jnp.float32)
    return out


def _masked_kernel(x_ref, mask_ref, w1_ref, b1_ref, w2_ref, b2_ref, o_ref):
    # x: (TB, S, D), mask: (TB, S) float32 with 1.0 == masked-out
    x = x_ref[...].astype(jnp.float32)
    valid = 1.0 - mask_ref[...]                       # (TB, S), 1.0 where kept
    num = jnp.sum(x * valid[:, :, None], axis=1)      # (TB, D) f32 accumulate
    den = jnp.sum(valid, axis=1, keepdims=True)       # (TB, 1)
    # NOTE: a fully-masked row gives den == 0 -> NaN/Inf, same as the PyTorch ref.
    pooled = num * pl.reciprocal(den, approx=False)   # exact reciprocal (EUP)
    o_ref[...] = _mlp(pooled, w1_ref, b1_ref, w2_ref, b2_ref).astype(o_ref.dtype)


def _mean_kernel(x_ref, w1_ref, b1_ref, w2_ref, b2_ref, o_ref):
    # mask is None -> plain mean over seq; no mask DMA, no x*valid multiply.
    pooled = jnp.mean(x_ref[...].astype(jnp.float32), axis=1)   # (TB, D)
    o_ref[...] = _mlp(pooled, w1_ref, b1_ref, w2_ref, b2_ref).astype(o_ref.dtype)


def _nopool_kernel(x_ref, w1_ref, b1_ref, w2_ref, b2_ref, o_ref):
    # skip_mean=True -> x is already (TB, D), no pooling.
    pooled = x_ref[...].astype(jnp.float32)
    o_ref[...] = _mlp(pooled, w1_ref, b1_ref, w2_ref, b2_ref).astype(o_ref.dtype)


# ----------------------------- wrapper -------------------------------------- #

def _round_up(n, m):
    return ((n + m - 1) // m) * m


def _pick_batch_tile(batch, bytes_per_batch_row):
    """Largest batch tile (multiple of 8, <=512) whose double-buffered x stream
    fits in a ~24 MiB VMEM budget (leaves headroom under v7x's 64 MiB)."""
    budget = 24 << 20
    tb = budget // max(2 * bytes_per_batch_row, 1)
    tb = max(8, (min(int(tb), 512) // 8) * 8)
    return min(tb, _round_up(batch, 8))


def projection_head_avgpool(x, params, mask=None, skip_mean=False):
    """Pallas implementation of ProjectionHead_AvgPool.forward.

    x:    (B, S, d_k)  (or (B, d_k) if skip_mean=True), any float dtype.
    mask: optional (B, S) bool, True == masked-out position.
    """
    w1, b1, w2, b2 = params          # w1:(d_k,d_mlp) b1:(d_mlp,) w2:(d_mlp,d_mlp) b2:(d_mlp,)
    orig_B = x.shape[0]
    D = x.shape[-1]
    M = w1.shape[1]
    Mp = _round_up(M, 128)           # lane-dense weights / output
    out_dtype = x.dtype

    if Mp != M:
        w1 = jnp.pad(w1, ((0, 0), (0, Mp - M)))
        b1 = jnp.pad(b1, (0, Mp - M))
        w2 = jnp.pad(w2, ((0, Mp - M), (0, Mp - M)))
        b2 = jnp.pad(b2, (0, Mp - M))
    b1 = b1.reshape(1, Mp)
    b2 = b2.reshape(1, Mp)

    weight_specs = [
        pl.BlockSpec((D, Mp), lambda i: (0, 0)),
        pl.BlockSpec((1, Mp), lambda i: (0, 0)),
        pl.BlockSpec((Mp, Mp), lambda i: (0, 0)),
        pl.BlockSpec((1, Mp), lambda i: (0, 0)),
    ]

    if skip_mean:
        # No pooling; a provided mask is ignored (matches the PyTorch module,
        # whose masked_mean is simply not called when skip_mean=True).
        B = x.shape[0]
        TB = _pick_batch_tile(B, D * x.dtype.itemsize)
        Bp = _round_up(B, TB)
        if Bp != B:
            x = jnp.pad(x, ((0, Bp - B), (0, 0)))
        kernel = _nopool_kernel
        in_specs = [pl.BlockSpec((TB, D), lambda i: (i, 0))] + weight_specs
        args = (x, w1, b1, w2, b2)
    else:
        B, S, _ = x.shape
        TB = _pick_batch_tile(B, S * D * x.dtype.itemsize)
        Bp = _round_up(B, TB)
        if Bp != B:
            x = jnp.pad(x, ((0, Bp - B), (0, 0), (0, 0)))
        x_spec = pl.BlockSpec((TB, S, D), lambda i: (i, 0, 0))
        if mask is None:
            kernel = _mean_kernel
            in_specs = [x_spec] + weight_specs
            args = (x, w1, b1, w2, b2)
        else:
            mask_f = mask.astype(jnp.float32)
            if Bp != B:
                # padded rows are all-valid so den != 0 (rows are sliced off anyway)
                mask_f = jnp.pad(mask_f, ((0, Bp - B), (0, 0)))
            kernel = _masked_kernel
            in_specs = [x_spec, pl.BlockSpec((TB, S), lambda i: (i, 0))] + weight_specs
            args = (x, mask_f, w1, b1, w2, b2)

    grid = (Bp // TB,)
    out = pl.pallas_call(
        kernel,
        out_shape=jax.ShapeDtypeStruct((Bp, Mp), out_dtype),
        grid=grid,
        in_specs=in_specs,
        out_specs=pl.BlockSpec((TB, Mp), lambda i: (i, 0)),
        compiler_params=pltpu.CompilerParams(
            dimension_semantics=("parallel",),   # megacore sharding on v7x
            vmem_limit_bytes=48 << 20,
        ),
    )(*args)
    return out[:orig_B, :M]


def init_params(key, d_k, d_mlp, dtype=jnp.float32):
    """nn.Linear-style init; weights stored pre-transposed as (in, out)."""
    k1, k2, k3, k4 = jax.random.split(key, 4)
    bound1 = 1.0 / jnp.sqrt(d_k)
    bound2 = 1.0 / jnp.sqrt(d_mlp)
    w1 = jax.random.uniform(k1, (d_k, d_mlp), jnp.float32, -bound1, bound1).astype(dtype)
    b1 = jax.random.uniform(k2, (d_mlp,), jnp.float32, -bound1, bound1).astype(dtype)
    w2 = jax.random.uniform(k3, (d_mlp, d_mlp), jnp.float32, -bound2, bound2).astype(dtype)
    b2 = jax.random.uniform(k4, (d_mlp,), jnp.float32, -bound2, bound2).astype(dtype)
    return (w1, b1, w2, b2)


# ----------------------------- self-test ------------------------------------ #

if __name__ == "__main__":
    key = jax.random.PRNGKey(0)
    kx, kmask, kparams = jax.random.split(key, 3)

    B, S, d_k, d_mlp = 2, 8, 32, 32
    x = jax.random.normal(kx, (B, S, d_k), dtype=jnp.float32)
    # Mask with some True (masked) entries, at least one valid position per row.
    mask = jax.random.bernoulli(kmask, p=0.3, shape=(B, S))
    mask = mask.at[:, 0].set(False)

    params = init_params(kparams, d_k, d_mlp)
    w1, b1, w2, b2 = params

    # masked path
    out_masked = projection_head_avgpool(x, params, mask=mask)
    # plain-mean path (mask=None)
    out_plain = projection_head_avgpool(x, params, mask=None)
    # skip_mean path (x already pooled)
    x2 = jax.random.normal(kx, (B, d_k), dtype=jnp.float32)
    out_skip = projection_head_avgpool(x2, params, skip_mean=True)

    jax.block_until_ready((out_masked, out_plain, out_skip))

    # Pure-JAX references of the same math.
    valid = (~mask).astype(jnp.float32)
    pooled_ref = jnp.sum(x * valid[:, :, None], axis=1) / jnp.sum(
        valid, axis=1, keepdims=True)
    ref_masked = jnp.maximum(pooled_ref @ w1 + b1, 0.0) @ w2 + b2
    ref_plain = jnp.maximum(jnp.mean(x, axis=1) @ w1 + b1, 0.0) @ w2 + b2
    ref_skip = jnp.maximum(x2 @ w1 + b1, 0.0) @ w2 + b2

    assert out_masked.shape == (B, d_mlp)
    assert jnp.allclose(out_masked, ref_masked, atol=1e-5, rtol=1e-5)
    assert jnp.allclose(out_plain, ref_plain, atol=1e-5, rtol=1e-5)
    assert jnp.allclose(out_skip, ref_skip, atol=1e-5, rtol=1e-5)

    print("KERNEL_OK")
</pallas_src>

<mosaic_0001>
module attributes {stable_mosaic.version = 11 : i64} {
  func.func @_masked_kernel(%arg0: i32, %arg1: memref<8x8x32xf32, #tpu.memory_space<vmem>>, %arg2: memref<8x8xf32, #tpu.memory_space<vmem>>, %arg3: memref<32x128xf32, #tpu.memory_space<vmem>>, %arg4: memref<1x128xf32, #tpu.memory_space<vmem>>, %arg5: memref<128x128xf32, #tpu.memory_space<vmem>>, %arg6: memref<1x128xf32, #tpu.memory_space<vmem>>, %arg7: memref<8x128xf32, #tpu.memory_space<vmem>>) attributes {dimension_semantics = [#tpu.dimension_semantics<parallel>], iteration_bounds = array<i64: 1>, scalar_prefetch = 0 : i64, scratch_operands = 0 : i64, tpu.core_type = #tpu.core_type<tc>, window_params = [{transform_indices = @transform_0, window_bounds = array<i64: 8, 8, 32>}, {transform_indices = @transform_1, window_bounds = array<i64: 8, 8>}, {pipeline_mode = #tpu.pipeline_mode<synchronous>, transform_indices = @transform_2, window_bounds = array<i64: 32, 128>}, {pipeline_mode = #tpu.pipeline_mode<synchronous>, transform_indices = @transform_3, window_bounds = array<i64: 1, 128>}, {pipeline_mode = #tpu.pipeline_mode<synchronous>, transform_indices = @transform_4, window_bounds = array<i64: 128, 128>}, {pipeline_mode = #tpu.pipeline_mode<synchronous>, transform_indices = @transform_5, window_bounds = array<i64: 1, 128>}, {transform_indices = @transform_6, window_bounds = array<i64: 8, 128>}]} {
    %c0 = arith.constant 0 : index
    %c0_0 = arith.constant 0 : index
    %c0_1 = arith.constant 0 : index
    %0 = vector.load %arg1[%c0, %c0_0, %c0_1] : memref<8x8x32xf32, #tpu.memory_space<vmem>>, vector<8x8x32xf32>
    %c0_2 = arith.constant 0 : index
    %c0_3 = arith.constant 0 : index
    %1 = vector.load %arg2[%c0_2, %c0_3] : memref<8x8xf32, #tpu.memory_space<vmem>>, vector<8x8xf32>
    %cst = arith.constant 1.000000e+00 : f32
    %2 = vector.broadcast %cst : f32 to vector<8x8xf32>
    %3 = arith.subf %2, %1 : vector<8x8xf32>
    %4 = vector.shape_cast %3 : vector<8x8xf32> to vector<8x8x1xf32>
    %5 = vector.broadcast %4 : vector<8x8x1xf32> to vector<8x8x32xf32>
    %6 = arith.mulf %0, %5 : vector<8x8x32xf32>
    %cst_4 = arith.constant dense<0.000000e+00> : vector<8x32xf32>
    %7 = vector.multi_reduction <add>, %6, %cst_4 [1] : vector<8x8x32xf32> to vector<8x32xf32>
    %cst_5 = arith.constant dense<0.000000e+00> : vector<8xf32>
    %8 = vector.multi_reduction <add>, %3, %cst_5 [1] : vector<8x8xf32> to vector<8xf32>
    %9 = vector.shape_cast %8 : vector<8xf32> to vector<8x1xf32>
    %10 = tpu.reciprocal %9 : vector<8x1xf32> -> vector<8x1xf32>
    %11 = vector.broadcast %10 : vector<8x1xf32> to vector<8x32xf32>
    %12 = arith.mulf %7, %11 : vector<8x32xf32>
    %c0_6 = arith.constant 0 : index
    %c0_7 = arith.constant 0 : index
    %13 = vector.load %arg3[%c0_6, %c0_7] : memref<32x128xf32, #tpu.memory_space<vmem>>, vector<32x128xf32>
    %cst_8 = arith.constant dense<0.000000e+00> : vector<8x128xf32>
    %14 = tpu.matmul %12, %13, %cst_8 {dimension_numbers = #tpu.dot_dimension_numbers<[1], [0], [0], [1], [0, 0, 1, 1], [], []>} : vector<8x32xf32>, vector<32x128xf32>, vector<8x128xf32> -> vector<8x128xf32>
    %c0_9 = arith.constant 0 : index
    %c0_10 = arith.constant 0 : index
    %15 = vector.load %arg4[%c0_9, %c0_10] : memref<1x128xf32, #tpu.memory_space<vmem>>, vector<1x128xf32>
    %16 = vector.broadcast %15 : vector<1x128xf32> to vector<8x128xf32>
    %17 = arith.addf %14, %16 : vector<8x128xf32>
    %cst_11 = arith.constant 0.000000e+00 : f32
    %18 = vector.broadcast %cst_11 : f32 to vector<8x128xf32>
    %19 = arith.maximumf %17, %18 : vector<8x128xf32>
    %c0_12 = arith.constant 0 : index
    %c0_13 = arith.constant 0 : index
    %20 = vector.load %arg5[%c0_12, %c0_13] : memref<128x128xf32, #tpu.memory_space<vmem>>, vector<128x128xf32>
    %cst_14 = arith.constant dense<0.000000e+00> : vector<8x128xf32>
    %21 = tpu.matmul %19, %20, %cst_14 {dimension_numbers = #tpu.dot_dimension_numbers<[1], [0], [0], [1], [0, 0, 1, 1], [], []>} : vector<8x128xf32>, vector<128x128xf32>, vector<8x128xf32> -> vector<8x128xf32>
    %c0_15 = arith.constant 0 : index
    %c0_16 = arith.constant 0 : index
    %22 = vector.load %arg6[%c0_15, %c0_16] : memref<1x128xf32, #tpu.memory_space<vmem>>, vector<1x128xf32>
    %23 = vector.broadcast %22 : vector<1x128xf32> to vector<8x128xf32>
    %24 = arith.addf %21, %23 : vector<8x128xf32>
    %c0_17 = arith.constant 0 : index
    %c0_18 = arith.constant 0 : index
    %25 = vector.load %arg7[%c0_17, %c0_18] : memref<8x128xf32, #tpu.memory_space<vmem>>, vector<8x128xf32>
    tpu.vector_store %arg7[%c0_17, %c0_18], %24 {strides = array<i32>} : memref<8x128xf32, #tpu.memory_space<vmem>>, vector<8x128xf32>,
    return
  }
  func.func @transform_0(%arg0: i32) -> (i32, i32, i32) {
    %c0_i32 = arith.constant 0 : i32
    %c0_i32_0 = arith.constant 0 : i32
    %c0_i32_1 = arith.constant 0 : i32
    return %arg0, %c0_i32, %c0_i32_0 : i32, i32, i32
  }
  func.func @transform_1(%arg0: i32) -> (i32, i32) {
    %c0_i32 = arith.constant 0 : i32
    %c0_i32_0 = arith.constant 0 : i32
    return %arg0, %c0_i32 : i32, i32
  }
  func.func @transform_2(%arg0: i32) -> (i32, i32) {
    %c0_i32 = arith.constant 0 : i32
    %c0_i32_0 = arith.constant 0 : i32
    %c0_i32_1 = arith.constant 0 : i32
    return %c0_i32, %c0_i32_0 : i32, i32
  }
  func.func @transform_3(%arg0: i32) -> (i32, i32) {
    %c0_i32 = arith.constant 0 : i32
    %c0_i32_0 = arith.constant 0 : i32
    %c0_i32_1 = arith.constant 0 : i32
    return %c0_i32, %c0_i32_0 : i32, i32
  }
  func.func @transform_4(%arg0: i32) -> (i32, i32) {
    %c0_i32 = arith.constant 0 : i32
    %c0_i32_0 = arith.constant 0 : i32
    %c0_i32_1 = arith.constant 0 : i32
    return %c0_i32, %c0_i32_0 : i32, i32
  }
  func.func @transform_5(%arg0: i32) -> (i32, i32) {
    %c0_i32 = arith.constant 0 : i32
    %c0_i32_0 = arith.constant 0 : i32
    %c0_i32_1 = arith.constant 0 : i32
    return %c0_i32, %c0_i32_0 : i32, i32
  }
  func.func @transform_6(%arg0: i32) -> (i32, i32) {
    %c0_i32 = arith.constant 0 : i32
    %c0_i32_0 = arith.constant 0 : i32
    return %arg0, %c0_i32 : i32, i32
  }
}

</mosaic_0001>

<bundles_post_ra>
// kernel: tpu_custom_call.1
= control target key start
LH: loop header
LB: loop body
LE: loop exit
PB: predicated region body
PF: predicated region fallthrough
CT: control target
= control target key end

     0   :  { %11 = vsyncpa [#allocation3], 0  ;;  %s747_s0 = inlined_call_operand.hbm [shape: f32[8,8,32], index: 0, kind: input, shape index: {}]   ;;  %s748_s1 = inlined_call_operand.hbm [shape: f32[8,8], index: 1, kind: input, shape index: {}]   ;;  %s749_s2 = inlined_call_operand.hbm [shape: f32[32,128], index: 2, kind: input, shape index: {}]   ;;  %s750_s3 = inlined_call_operand.vmem [shape: f32[1,128], index: 3, kind: input, shape index: {}]   ;;  %s751_s4 = inlined_call_operand.hbm [shape: f32[128,128], index: 4, kind: input, shape index: {}]   ;;  %s752_s5 = inlined_call_operand.vmem [shape: f32[1,128], index: 5, kind: input, shape index: {}]   ;;  %s753_s6 = inlined_call_operand.hbm [shape: f32[8,128], index: 6, kind: output, shape index: {}]  }
   0x1   :  { %12 = vsyncpa [#allocation6], 0 }
   0x2   :  { %13 = vsyncpa [#allocation9], 0 }
   0x3   :  { %14 = vsyncpa [#allocation4], 0  ;;  %s651_s21 = smov [#allocation5]   ;;  %s652_s23 = smov [#allocation2]  }
   0x4   :  { %s33_s22 = sshll.u32 %s651_s21, 4  ;;  %s20_s24 = sshll.u32 %s652_s23, 4  ;;  %s34_s22 = int_to_ptr.vmem [resolvable:$true] %s33_s22  ;;  %s21_s24 = int_to_ptr.vmem [resolvable:$true] %s20_s24 }
   0x5   :  { %s551_s25 = scalar_lea.vmem %s34_s22, 128  ;;  %p556_p1 = scmp.lt.s32.totalorder %s34_s22, %s34_s22 }
   0x6   :  { %p552_p0 = scmp.ne.s32.totalorder %s34_s22, %s551_s25  ;;  %p557_p2 = scmp.lt.s32.totalorder %s551_s25, %s551_s25 }
   0x8   :  { %p558_p3 = por %p557_p2, %p556_p1 }
   0xa   :  { %p559_p4 = pnand %p558_p3, %p552_p0 }
   0xc   :  { %562 = shalt.err (!%p559_p4)
}
   0xd   :  { %36 = dma.hbm_to_vmem [thread:$0]  %s748_s1, 128, %s34_s22, [#allocation6]  }
   0xe   :  { %s571_s28 = scalar_lea.vmem %s21_s24, 1024  ;;  %p576_p6 = scmp.lt.s32.totalorder %s21_s24, %s21_s24 }
   0xf   :  { %p572_p5 = scmp.ne.s32.totalorder %s21_s24, %s571_s28  ;;  %p577_p7 = scmp.lt.s32.totalorder %s571_s28, %s571_s28 }
  0x11   :  { %p578_p8 = por %p577_p7, %p576_p6 }
  0x13   :  { %p579_p9 = pnand %p578_p8, %p572_p5 }
  0x15   :  { %582 = shalt.err (!%p579_p9)
}
  0x16   :  { %s653_s29 = smov 128   ;;  %s654_s30 = smov 8  }
  0x17   :  { %26 = dma.hbm_to_vmem [thread:$0]  %s747_s0, 1024, %s21_s24, [#allocation3], %s653_s29, %s653_s29, %s654_s30  }
  0x18   :  { %s655_s9 = smov [#allocation7]   ;;  %s656_s11 = smov [#allocation8]  }
  0x19   :  { %s42_s10 = sshll.u32 %s655_s9, 4  ;;  %s56_s12 = sshll.u32 %s656_s11, 4  ;;  %s43_s10 = int_to_ptr.vmem [resolvable:$true] %s42_s10  ;;  %s57_s12 = int_to_ptr.vmem [resolvable:$true] %s56_s12 }
  0x1a   :  { %s591_s1 = scalar_lea.vmem %s43_s10, 512  ;;  %p596_p11 = scmp.lt.s32.totalorder %s43_s10, %s43_s10 }
  0x1b   :  { %p592_p10 = scmp.ne.s32.totalorder %s43_s10, %s591_s1  ;;  %p597_p12 = scmp.lt.s32.totalorder %s591_s1, %s591_s1 }
  0x1d   :  { %p598_p13 = por %p597_p12, %p596_p11 }
  0x1f   :  { %p599_p0 = pnand %p598_p13, %p592_p10 }
  0x21   :  { %602 = shalt.err (!%p599_p0)
}
  0x22   :  { %48 = dma.hbm_to_vmem [thread:$0]  %s749_s2, 512, %s43_s10, [#allocation6], %s653_s29, %s653_s29, %s654_s30  }
  0x23   :  { %s611_s15 = scalar_lea.vmem %s57_s12, 2048  ;;  %p616_p2 = scmp.lt.s32.totalorder %s57_s12, %s57_s12 }
  0x24   :  { %p612_p1 = scmp.ne.s32.totalorder %s57_s12, %s611_s15  ;;  %p617_p3 = scmp.lt.s32.totalorder %s611_s15, %s611_s15 }
  0x26   :  { %p618_p4 = por %p617_p3, %p616_p2 }
  0x28   :  { %p619_p5 = pnand %p618_p4, %p612_p1 }
  0x2a   :  { %622 = shalt.err (!%p619_p5)
}
  0x2b   :  { %62 = dma.hbm_to_vmem [thread:$0]  %s751_s4, 2048, %s57_s12, [#allocation9], %s653_s29, %s653_s29, %s654_s30  }
  0x2c   :  { %643 = dma.done.wait [#allocation3], 1024  }
  0x2d   :  { %644 = vsyncadd [#allocation3], 4294966272 }
  0x2e   :  { %645 = dma.done.wait [#allocation6], 640  }
  0x2f   :  { %646 = vsyncadd [#allocation6], 4294966656 }
  0x30   :  { %647 = dma.done.wait [#allocation9], 2048  }
  0x31   :  { %648 = vsyncadd [#allocation9], 4294965248  ;;  %v87_v0 = vlaneseq  ;;  %v85_v3 = vld [vmem:[#allocation5] sm:$0xff]  ;;  %vm208_vm0 = vcmask 64512   ;;  %v657_v21 = vmov 0.0   ;;  %v239_v23 = vld [vmem:[#allocation7 + $0x10] sm:$0xff] }
  0x32   :  { %v86_v4 = vsub.f32 1.0, %v85_v3  ;;  %486 = vmatprep.subr.mxu0 %v657_v21  ;;  %v240_v22 = vld [vmem:[#allocation7 + $0x18] sm:$0xff]  ;;  %497 = vmatprep.subr.mxu1 %v657_v21  ;;  %v238_v24 = vld [vmem:[#allocation7 + $0x8] sm:$0xff]  ;;  %vm658_vm1 = vmmov 0   ;;  %v237_v25 = vld [vmem:[#allocation7] sm:$0xff]  ;;  %vm151_vm2 = vcmask 261120  }
  0x33   :  { %v88_v1 = vshrl.u32 %v87_v0, 7  ;;  %487 = vmatpush3.msra.mxu0 %v240_v22  ;;  %494 = vmatprep.mubr.msk.f32.mxu0 %vm658_vm1, %v657_v21  ;;  %v365_v26 = vld [vmem:[#allocation8 + $0x78] sm:$0xff]  ;;  %v364_v27 = vld [vmem:[#allocation8 + $0x70] sm:$0xff]  ;;  %v363_v28 = vld [vmem:[#allocation8 + $0x68] sm:$0xff]  ;;  %vm257_vm3 = vcmask 1041409   ;;  %vm260_vm4 = vcmask 1042434  }
  0x34   :  { %v209_v6 = vsel %vm208_vm0, %v86_v4, 0.0  ;;  %488 = vmatprep.subr.mxu0 %v657_v21  ;;  %529 = vmatprep.mubr.msk.f32.mxu1 %vm658_vm1, %v657_v21  ;;  %v362_v29 = vld [vmem:[#allocation8 + $0x60] sm:$0xff]  ;;  %v361_v30 = vld [vmem:[#allocation8 + $0x58] sm:$0xff]  ;;  %v360_v31 = vld [vmem:[#allocation8 + $0x50] sm:$0xff]  ;;  %vm263_vm5 = vcmask 1043459   ;;  %vm266_vm6 = vcmask 1044484  }
  0x35   :  { %v103_v2 = vsub.s32 2, %v88_v1  ;;  %v89_v5 = vsub.s32 0, %v88_v1  ;;  %210 = vadd.xlane.f32.xlu0 %v209_v6  ;;  %v110_v9 = vsub.s32 3, %v88_v1  ;;  %v117_v11 = vsub.s32 4, %v88_v1  ;;  %489 = vmatpush3.msra.mxu0 %v239_v23  ;;  %v359_v32 = vld [vmem:[#allocation8 + $0x48] sm:$0xff]  ;;  %v358_v33 = vld [vmem:[#allocation8 + $0x40] sm:$0xff] }
  0x36   :  { %v124_v13 = vsub.s32 5, %v88_v1  ;;  %v131_v15 = vsub.s32 6, %v88_v1  ;;  %v96_v16 = vsub.s32 1, %v88_v1  ;;  %v138_v18 = vsub.s32 7, %v88_v1  ;;  %490 = vmatprep.subr.mxu0 %v657_v21  ;;  %498 = vmatpush3.msra.mxu1 %v365_v26  ;;  %v357_v34 = vld [vmem:[#allocation8 + $0x38] sm:$0xff]  ;;  %v356_v35 = vld [vmem:[#allocation8 + $0x30] sm:$0xff] }
  0x37   :  { %v104_v7 = vrot.slane %v86_v4, %v103_v2  ;;  %v90_v8 = vrot.slane %v86_v4, %v89_v5  ;;  %v111_v10 = vrot.slane %v86_v4, %v110_v9  ;;  %v118_v12 = vrot.slane %v86_v4, %v117_v11  ;;  %491 = vmatpush3.msra.mxu0 %v238_v24  ;;  %v355_v36 = vld [vmem:[#allocation8 + $0x28] sm:$0xff]  ;;  %v354_v37 = vld [vmem:[#allocation8 + $0x20] sm:$0xff]  ;;  %v353_v38 = vld [vmem:[#allocation8 + $0x18] sm:$0xff]  ;;  %s659_s19 = smov [#allocation10]  }
  0x38   :  { %v125_v14 = vrot.slane %v86_v4, %v124_v13  ;;  %v132_v17 = vrot.slane %v86_v4, %v131_v15  ;;  %v97_v19 = vrot.slane %v86_v4, %v96_v16  ;;  %v139_v20 = vrot.slane %v86_v4, %v138_v18  ;;  %492 = vmatprep.subr.mxu0 %v657_v21  ;;  %v79_v41 = vld [vmem:[#allocation2 + $0x10] sm:$0xff]  ;;  %v77_v43 = vld [vmem:[#allocation2] sm:$0xff]  ;;  %v80_v44 = vld [vmem:[#allocation2 + $0x18] sm:$0xff]  ;;  %s450_s20 = sshll.u32 %s659_s19, 4  ;;  %s451_s20 = int_to_ptr.vmem [resolvable:$true] %s450_s20 }
  0x39   :  { %106 = vbcast.lane.b32.xlu1 %v104_v7, 256  ;;  %493 = vmatpush3.msra.mxu0 %v237_v25  ;;  %v81_v45 = vld [vmem:[#allocation2 + $0x20] sm:$0xff]  ;;  %v82_v51 = vld [vmem:[#allocation2 + $0x28] sm:$0xff]  ;;  %v83_v59 = vld [vmem:[#allocation2 + $0x30] sm:$0xff]  ;;  %vm269_vm7 = vcmask 1045509   ;;  %vm272_vm8 = vcmask 1046534   ;;  %p628_p7 = scmp.lt.s32.totalorder %s451_s20, %s451_s20 }
  0x3a   :  { %499 = vmatprep.subr.mxu1 %v657_v21  ;;  %v84_v5 = vld [vmem:[#allocation2 + $0x38] sm:$0xff]  ;;  %vm275_vm9 = vcmask 1047559   ;;  %s623_s21 = scalar_lea.vmem %s451_s20, 128 }
  0x3b   :  { %500 = vmatpush3.msra.mxu1 %v364_v27  ;;  %p624_p6 = scmp.ne.s32.totalorder %s451_s20, %s623_s21  ;;  %p629_p8 = scmp.lt.s32.totalorder %s623_s21, %s623_s21 }
  0x3c   :  { %501 = vmatprep.subr.mxu1 %v657_v21 }
  0x3d   :  { %92 = vbcast.lane.b32.xlu1 %v90_v8, 256  ;;  %502 = vmatpush3.msra.mxu1 %v363_v28  ;;  %p630_p9 = por %p629_p8, %p628_p7 }
  0x3e   :  { %503 = vmatprep.subr.mxu1 %v657_v21 }
  0x3f   :  { %504 = vmatpush3.msra.mxu1 %v362_v29  ;;  %p631_p10 = pnand %p630_p9, %p624_p6 }
  0x40   :  { %505 = vmatprep.subr.mxu1 %v657_v21 }
  0x41   :  { %113 = vbcast.lane.b32.xlu1 %v111_v10, 256  ;;  %506 = vmatpush3.msra.mxu1 %v361_v30 }
  0x42   :  { %507 = vmatprep.subr.mxu1 %v657_v21 }
  0x43   :  { %508 = vmatpush3.msra.mxu1 %v360_v31 }
  0x44   :  { %509 = vmatprep.subr.mxu1 %v657_v21 }
  0x45   :  { %120 = vbcast.lane.b32.xlu1 %v118_v12, 256  ;;  %510 = vmatpush3.msra.mxu1 %v359_v32  ;;  %v78_v12 = vld [vmem:[#allocation2 + $0x8] sm:$0xff] }
  0x46   :  { %511 = vmatprep.subr.mxu1 %v657_v21 }
  0x47   :  { %512 = vmatpush3.msra.mxu1 %v358_v33 }
  0x48   :  { %513 = vmatprep.subr.mxu1 %v657_v21 }
  0x49   :  { %127 = vbcast.lane.b32.xlu1 %v125_v14, 256  ;;  %514 = vmatpush3.msra.mxu1 %v357_v34 }
  0x4a   :  { %515 = vmatprep.subr.mxu1 %v657_v21 }
  0x4b   :  { %99 = vbcast.lane.b32.xlu0 %v97_v19, 256  ;;  %516 = vmatpush3.msra.mxu1 %v356_v35 }
  0x4c   :  { %517 = vmatprep.subr.mxu1 %v657_v21 }
  0x4d   :  { %134 = vbcast.lane.b32.xlu1 %v132_v17, 256  ;;  %518 = vmatpush3.msra.mxu1 %v355_v36 }
  0x4e   :  { %519 = vmatprep.subr.mxu1 %v657_v21 }
  0x4f   :  { %520 = vmatpush3.msra.mxu1 %v354_v37 }
  0x50   :  { %521 = vmatprep.subr.mxu1 %v657_v21 }
  0x51   :  { %141 = vbcast.lane.b32.xlu1 %v139_v20, 256  ;;  %522 = vmatpush3.msra.mxu1 %v353_v38 }
  0x52   :  { %523 = vmatprep.subr.mxu1 %v657_v21 }
  0xab   :  { %v107_v39 = vpop.permute.xlu1 %106 }
  0xac   :  { %v145_v46 = vmul.f32 %v107_v39, %v79_v41 }
  0xae   :  { %v166_v52 = vsel %vm151_vm2, %v145_v46, 0.0 }
  0xaf   :  { %v93_v40 = vpop.permute.xlu1 %92  ;;  %v167_v58 = vrot.slane %v166_v52, 4 }
  0xb0   :  { %v143_v47 = vmul.f32 %v93_v40, %v77_v43 }
  0xb1   :  { %v168_v3 = vadd.f32 %v167_v58, %v166_v52 }
  0xb2   :  { %v152_v53 = vsel %vm151_vm2, %v143_v47, 0.0 }
  0xb3   :  { %v114_v42 = vpop.permute.xlu1 %113  ;;  %v153_v60 = vrot.slane %v152_v53, 4  ;;  %v169_v15 = vrot.slane %v168_v3, 2 }
  0xb4   :  { %v146_v48 = vmul.f32 %v114_v42, %v80_v44 }
  0xb5   :  { %v154_v6 = vadd.f32 %v153_v60, %v152_v53  ;;  %v170_v30 = vadd.f32 %v169_v15, %v168_v3 }
  0xb6   :  { %v173_v54 = vsel %vm151_vm2, %v146_v48, 0.0 }
  0xb7   :  { %v121_v49 = vpop.permute.xlu1 %120  ;;  %v174_v61 = vrot.slane %v173_v54, 4  ;;  %v155_v18 = vrot.slane %v154_v6, 2  ;;  %v171_v40 = vrot.slane %v170_v30, 1 }
  0xb8   :  { %v147_v50 = vmul.f32 %v121_v49, %v81_v45 }
  0xb9   :  { %v175_v7 = vadd.f32 %v174_v61, %v173_v54  ;;  %v156_v31 = vadd.f32 %v155_v18, %v154_v6  ;;  %v172_v52 = vadd.f32 %v171_v40, %v170_v30 }
  0xba   :  { %v180_v56 = vsel %vm151_vm2, %v147_v50, 0.0 }
  0xbb   :  { %v128_v55 = vpop.permute.xlu1 %127  ;;  %v181_v63 = vrot.slane %v180_v56, 4  ;;  %v176_v19 = vrot.slane %v175_v7, 2  ;;  %v157_v41 = vrot.slane %v156_v31, 1 }
  0xbc   :  { %v148_v57 = vmul.f32 %v128_v55, %v82_v51 }
  0xbd   :  { %v182_v9 = vadd.f32 %v181_v63, %v180_v56  ;;  %v177_v32 = vadd.f32 %v176_v19, %v175_v7  ;;  %v158_v53 = vadd.f32 %v157_v41, %v156_v31 }
  0xbe   :  { %v187_v62 = vsel %vm151_vm2, %v148_v57, 0.0  ;;  %v211_v4 = vpop.xlane.xlu0 %210 }
  0xbf   :  { %v135_v0 = vpop.permute.xlu1 %134  ;;  %v188_v1 = vrot.slane %v187_v62, 4  ;;  %541 = vrcp.f32 %v211_v4  ;;  %v183_v23 = vrot.slane %v182_v9, 2  ;;  %v178_v42 = vrot.slane %v177_v32, 1 }
  0xc0   :  { %v149_v2 = vmul.f32 %v135_v0, %v83_v59 }
  0xc1   :  { %v189_v13 = vadd.f32 %v188_v1, %v187_v62  ;;  %v184_v33 = vadd.f32 %v183_v23, %v182_v9  ;;  %v179_v54 = vadd.f32 %v178_v42, %v177_v32  ;;  %v463_v32 = vld [vmem:[%s752_s5] ss:$0 sm:$0xff] }
  0xc2   :  { %v194_v8 = vsel %vm151_vm2, %v149_v2, 0.0  ;;  %v100_v17 = vpop.permute.xlu0 %99 }
  0xc3   :  { %v195_v10 = vrot.slane %v194_v8, 4  ;;  %v142_v11 = vpop.permute.xlu1 %141  ;;  %v144_v22 = vmul.f32 %v100_v17, %v78_v12  ;;  %v190_v25 = vrot.slane %v189_v13, 2  ;;  %v185_v44 = vrot.slane %v184_v33, 1 }
  0xc4   :  { %v150_v14 = vmul.f32 %v142_v11, %v84_v5 }
  0xc5   :  { %v196_v16 = vadd.f32 %v195_v10, %v194_v8  ;;  %v159_v27 = vsel %vm151_vm2, %v144_v22, 0.0  ;;  %v191_v36 = vadd.f32 %v190_v25, %v189_v13  ;;  %v186_v56 = vadd.f32 %v185_v44, %v184_v33  ;;  %v351_v25 = vld [vmem:[#allocation8 + $0x8] sm:$0xff] }
  0xc6   :  { %v201_v20 = vsel %vm151_vm2, %v150_v14, 0.0  ;;  %v160_v29 = vrot.slane %v159_v27, 4 }
  0xc7   :  { %v202_v24 = vrot.slane %v201_v20, 4  ;;  %v197_v26 = vrot.slane %v196_v16, 2  ;;  %v192_v46 = vrot.slane %v191_v36, 1 }
  0xc8   :  { %v161_v35 = vadd.f32 %v160_v29, %v159_v27  ;;  %v461_v27 = vld [vmem:[%s750_s3] ss:$0 sm:$0xff] }
  0xc9   :  { %v203_v28 = vadd.f32 %v202_v24, %v201_v20  ;;  %v198_v37 = vadd.f32 %v197_v26, %v196_v16  ;;  %v193_v60 = vadd.f32 %v192_v46, %v191_v36  ;;  %v352_v24 = vld [vmem:[#allocation8 + $0x10] sm:$0xff]  ;;  %v350_v26 = vld [vmem:[#allocation8] sm:$0xff] }
  0xca   :  { %v162_v39 = vrot.slane %v161_v35, 2  ;;  %524 = vmatpush3.msra.mxu1 %v352_v24 }
  0xcb   :  { %v204_v34 = vrot.slane %v203_v28, 2  ;;  %v199_v47 = vrot.slane %v198_v37, 1  ;;  %525 = vmatprep.subr.mxu1 %v657_v21 }
  0xcc   :  { %v542_v43 = vpop.eup %541  ;;  %v163_v45 = vadd.f32 %v162_v39, %v161_v35  ;;  %526 = vmatpush3.msra.mxu1 %v351_v25 }
  0xcd   :  { %v205_v38 = vadd.f32 %v204_v34, %v203_v28  ;;  %v215_v48 = vrot.slane %v542_v43, 2  ;;  %v216_v51 = vrot.slane %v542_v43, 3  ;;  %v217_v55 = vrot.slane %v542_v43, 4  ;;  %527 = vmatprep.subr.mxu1 %v657_v21 }
  0xce   :  { %v164_v50 = vrot.slane %v163_v45, 1  ;;  %v214_v57 = vrot.slane %v542_v43, 1  ;;  %v218_v59 = vrot.slane %v542_v43, 5  ;;  %v200_v61 = vadd.f32 %v199_v47, %v198_v37  ;;  %528 = vmatpush3.msra.mxu1 %v350_v26 }
  0xcf   :  { %v206_v49 = vrot.slane %v205_v38, 1  ;;  %v219_v62 = vrot.slane %v542_v43, 6  ;;  %v231_v63 = vmul.f32 %v215_v48, %v172_v52  ;;  %v220_v2 = vrot.slane %v542_v43, 7 }
  0xd0   :  { %v165_v58 = vadd.f32 %v164_v50, %v163_v45  ;;  %v232_v3 = vmul.f32 %v216_v51, %v179_v54  ;;  %v233_v4 = vmul.f32 %v217_v55, %v186_v56  ;;  %v229_v5 = vmul.f32 %v542_v43, %v158_v53 }
  0xd1   :  { %v207_v0 = vadd.f32 %v206_v49, %v205_v38  ;;  %v234_v7 = vmul.f32 %v218_v59, %v193_v60  ;;  %v235_v8 = vmul.f32 %v219_v62, %v200_v61  ;;  %v259_v9 = vrot.slane %v231_v63, 6 }
  0xd2   :  { %v230_v1 = vmul.f32 %v214_v57, %v165_v58  ;;  %v262_v12 = vrot.slane %v232_v3, 5  ;;  %v265_v14 = vrot.slane %v233_v4, 4 }
  0xd3   :  { %v236_v11 = vmul.f32 %v220_v2, %v207_v0  ;;  %v268_v16 = vrot.slane %v234_v7, 3  ;;  %v271_v18 = vrot.slane %v235_v8, 2 }
  0xd4   :  { %v256_v6 = vrot.slane %v230_v1, 7 }
  0xd5   :  { %v274_v20 = vrot.slane %v236_v11, 1 }
  0xd6   :  { %v258_v10 = vsel %vm257_vm3, %v256_v6, %v229_v5 }
  0xd7   :  { %v261_v13 = vsel %vm260_vm4, %v259_v9, %v258_v10 }
  0xd8   :  { %v264_v15 = vsel %vm263_vm5, %v262_v12, %v261_v13 }
  0xd9   :  { %v267_v17 = vsel %vm266_vm6, %v265_v14, %v264_v15 }
  0xda   :  { %v270_v19 = vsel %vm269_vm7, %v268_v16, %v267_v17 }
  0xdb   :  { %v273_v22 = vsel %vm272_vm8, %v271_v18, %v270_v19 }
  0xdc   :  { %v276_v23 = vsel %vm275_vm9, %v274_v20, %v273_v22 }
  0xdd   :  { %495 = vmatmul.mubr.msk.f32.vlgmr.msra.gmra.mxu0 %vm151_vm2, %v276_v23 }
 0x19d   :  { %v345_v28 = vpop.f32.mrf.mxu0 }
 0x19e   :  { %v346_v29 = vadd.f32 %v461_v27, %v345_v28 }
 0x19f   :  { %v496_v30 = vpop.f32.mrf.mxu0 }
 0x1a0   :  { %v349_v31 = vmax.f32 %v346_v29, 0.0 }
 0x1a2   :  { %530 = vmatmul.mubr.f32.vlgmr.msra.gmra.mxu1 %v349_v31 }
 0x262   :  { %v439_v33 = vpop.f32.mrf.mxu1 }
 0x263   :  { %v440_v34 = vadd.f32 %v463_v32, %v439_v33 }
 0x264   :  { %v531_v21 = vpop.f32.mrf.mxu1 }
 0x265   :  { %443 = vst [vmem:[#allocation10] sm:$0xff] %v440_v34 }
 0x266   :  { %634 = shalt.err (!%p631_p10)
}
 0x267   :  { %453 = dma.vmem_to_hbm [thread:$0]  %s451_s20, 128, %s753_s6, [#allocation4]  }
 0x268   :  { %649 = dma.done.wait [#allocation4], 128  }
 0x269   :  { %650 = vsyncadd [#allocation4], 4294967168 }
 0x26a   :  { %457 = vsyncpa [#allocation3], 1 }
 0x26b   :  { %458 = vsyncpa [#allocation6], 1 }
 0x26c   :  { %459 = vsyncpa [#allocation9], 1 }
 0x26d   :  { %460 = vsyncpa [#allocation4], 1 }

</bundles_post_ra>
